<compile_context>
chip_gen: v7x
topology: tpu7x:2x2x1
jax: 0.10.0
libtpu: 0.0.40
codegen_flags: <defaults>
</compile_context>

<pallas_src>
import functools

import jax
import jax.numpy as jnp
from jax.experimental import pallas as pl
from jax.experimental.pallas import tpu as pltpu

_LANES = 128
_SUBLANES = 8


def _int_pow(x, n: int):
    """x**n for a small positive python int n via pow-by-squaring (VPU mults)."""
    assert n >= 1
    result = None
    base = x
    while n > 0:
        if n & 1:
            result = base if result is None else result * base
        n >>= 1
        if n:
            base = base * base
    return result


def _distill_loss_kernel(student_ref, teacher_ref, labels_ref, out_ref, *,
                         alpha: float, temperature: float, batch: int,
                         tile_b: int, pow_exp):
    """Per-tile fused KD loss.

    Computes sum over the tile's valid rows of
        (1 - alpha) * CE_row + alpha * T^2 * KL_row
    and writes it to element [0, 0] of a lane-dense (8, 128) output block
    (zeros elsewhere).  Rows past the true batch size (ragged last block) are
    masked to zero before the reduction, so garbage/NaN in the out-of-bounds
    region cannot leak.  The wrapper sums all partials and divides by B
    (CE 'mean' and KLDiv 'batchmean' share the same 1/B factor).
    """
    i = pl.program_id(0)
    s = student_ref[...].astype(jnp.float32)       # (tb, C)
    t = teacher_ref[...].astype(jnp.float32)       # (tb, C)
    lbl = labels_ref[...]                          # (tb, 1) int32
    tb, c = s.shape

    inv_t = jnp.float32(1.0 / temperature)
    t_sq = jnp.float32(temperature * temperature)

    # ---- student: single cross-lane max, reused by both softmaxes ----
    s_max = jnp.max(s, axis=1, keepdims=True)                        # (tb, 1)
    sT_shift = (s - s_max) * inv_t                                   # (tb, C)
    e_sT = jnp.exp(sT_shift)                                         # exp((s-max)/T)
    log_sum_e_sT = jnp.log(jnp.sum(e_sT, axis=1, keepdims=True))     # (tb, 1)

    # exp(s - max): reuse the EUP result via integer power when T is integer
    # (2-3 VPU multiplies instead of a second full-width exp).
    if pow_exp is not None:
        e_s = _int_pow(e_sT, pow_exp)
    else:
        e_s = jnp.exp(s - s_max)
    lse_s = s_max + jnp.log(jnp.sum(e_s, axis=1, keepdims=True))     # logsumexp(s)

    # ---- teacher: softmax(t/T) statistics, no log_p / log_q arrays ----
    t_max = jnp.max(t, axis=1, keepdims=True)
    tT_shift = (t - t_max) * inv_t
    t_exp = jnp.exp(tT_shift)
    t_sum = jnp.sum(t_exp, axis=1, keepdims=True)
    inv_t_sum = 1.0 / t_sum                                          # exact (tb, 1)

    # KL_row = sum_c p*(log p - log q), with sum_c p = 1:
    #        = E_p[tT_shift] - E_p[sT_shift] - log(t_sum) + log(sum exp(sT_shift))
    e_p_tT = jnp.sum(t_exp * tT_shift, axis=1, keepdims=True) * inv_t_sum
    e_p_sT = jnp.sum(t_exp * sT_shift, axis=1, keepdims=True) * inv_t_sum
    kl_row = e_p_tT - e_p_sT - jnp.log(t_sum) + log_sum_e_sT         # (tb, 1)

    # ---- hard labels: CE_row = logsumexp(s) - s[label] ----
    cls = jax.lax.broadcasted_iota(jnp.int32, (tb, c), 1)
    label_logit = jnp.sum(jnp.where(cls == lbl, s, 0.0), axis=1, keepdims=True)
    ce_row = lse_s - label_logit                                     # (tb, 1)

    row_loss = (1.0 - alpha) * ce_row + (alpha * t_sq) * kl_row      # (tb, 1)

    # mask rows beyond the true batch (ragged last block) BEFORE reducing
    row_idx = i * tile_b + jax.lax.broadcasted_iota(jnp.int32, (tb, 1), 0)
    row_loss = jnp.where(row_idx < batch, row_loss, 0.0)

    tile_sum = jnp.sum(row_loss)                                     # scalar partial

    # one lane-dense (8, 128) partial per tile: value at [0, 0], zeros elsewhere
    r = jax.lax.broadcasted_iota(jnp.int32, (_SUBLANES, _LANES), 0)
    l = jax.lax.broadcasted_iota(jnp.int32, (_SUBLANES, _LANES), 1)
    out_ref[...] = jnp.where((r == 0) & (l == 0), tile_sum, 0.0)


def distillation_loss(student_logits, teacher_logits, labels,
                      alpha: float = 0.5, temperature: float = 5.0,
                      tile_b=None, cast_inputs_to_bf16: bool = False):
    """JAX/Pallas equivalent of DistillationLoss.forward. Returns a scalar f32."""
    labels = jnp.squeeze(labels)
    B, C = student_logits.shape
    labels2d = labels.reshape(B, 1).astype(jnp.int32)

    if cast_inputs_to_bf16:
        # HBM-bandwidth-bound on v5e/v6e: halving the input bytes ~halves wall
        # clock there.  In-kernel math stays f32; precision tradeoff is opt-in.
        student_logits = student_logits.astype(jnp.bfloat16)
        teacher_logits = teacher_logits.astype(jnp.bfloat16)

    # ---- generation-aware VMEM sizing ----
    try:
        vmem_cap = int(pltpu.get_tpu_info().vmem_capacity_bytes)
    except Exception:
        vmem_cap = 64 * 1024 * 1024            # conservative (v7x-sized) fallback
    work_budget = int(vmem_cap * 0.70)         # ~45 MiB on v7x, ~90 MiB on v5e/v6e
    vmem_limit = int(vmem_cap * 0.85)

    itemsize = jnp.dtype(student_logits.dtype).itemsize
    # Real per-row working set: 2 logit inputs x 2 pipeline buffers, plus the
    # ~6 simultaneously-live f32 (C,)-temporaries the kernel materializes
    # (f32 upcasts, sT_shift, tT_shift, t_exp, exp products), plus the
    # double-buffered output block amortized per row.
    row_bytes = 2 * 2 * C * itemsize + 24 * C + 2 * _LANES * 4

    if tile_b is None:
        cap = max(_SUBLANES,
                  (work_budget // max(row_bytes, 1)) // _SUBLANES * _SUBLANES)
        tile_b = int(min(cap, 512, pl.cdiv(B, _SUBLANES) * _SUBLANES))
    tile_b = max(_SUBLANES, (int(tile_b) // _SUBLANES) * _SUBLANES)

    # no jnp.pad of the logits: ragged last block is masked inside the kernel
    num_tiles = pl.cdiv(B, tile_b)

    # exp(s - max) = exp((s - max)/T)**T when T is a small integer -> one fewer
    # full-width EUP exp per element (EUP is the binding slot on v7x).
    t_int = int(round(float(temperature)))
    pow_exp = t_int if (abs(float(temperature) - t_int) < 1e-9
                        and 1 <= t_int <= 64) else None

    kernel = functools.partial(_distill_loss_kernel,
                               alpha=float(alpha),
                               temperature=float(temperature),
                               batch=int(B),
                               tile_b=int(tile_b),
                               pow_exp=pow_exp)

    partials = pl.pallas_call(
        kernel,
        out_shape=jax.ShapeDtypeStruct((num_tiles * _SUBLANES, _LANES), jnp.float32),
        grid=(num_tiles,),
        in_specs=[
            pl.BlockSpec((tile_b, C), lambda i: (i, 0)),   # student logits
            pl.BlockSpec((tile_b, C), lambda i: (i, 0)),   # teacher logits
            pl.BlockSpec((tile_b, 1), lambda i: (i, 0)),   # labels
        ],
        out_specs=pl.BlockSpec((_SUBLANES, _LANES), lambda i: (i, 0)),
        compiler_params=pltpu.CompilerParams(
            dimension_semantics=("parallel",),             # shards over v7x's 2 TCs
            vmem_limit_bytes=vmem_limit),
    )(student_logits, teacher_logits, labels2d)

    # each tile wrote exactly one nonzero partial; padded rows were masked in-kernel.
    return jnp.sum(partials) / jnp.float32(B)


def _reference_loss(s, t, lbl, alpha, temperature):
    """Pure-JAX reference matching the PyTorch module (CE mean + KLDiv batchmean)."""
    lbl = jnp.squeeze(lbl).reshape(-1)
    log_q = jax.nn.log_softmax(s / temperature, axis=1)
    p = jax.nn.softmax(t / temperature, axis=1)
    kl = jnp.sum(p * (jnp.log(p) - log_q)) / s.shape[0]          # batchmean
    ce = jnp.mean(jax.nn.logsumexp(s, axis=1) - s[jnp.arange(s.shape[0]), lbl])
    return (1.0 - alpha) * ce + alpha * (temperature ** 2) * kl


if __name__ == "__main__":
    key = jax.random.PRNGKey(0)
    k_s, k_t, k_l = jax.random.split(key, 3)

    B, C = 8, 16  # small batch / num-classes consistent with logits + int labels
    student = jax.random.normal(k_s, (B, C), dtype=jnp.float32)
    teacher = jax.random.normal(k_t, (B, C), dtype=jnp.float32)
    labels = jax.random.randint(k_l, (B, 1), 0, C, dtype=jnp.int32)  # squeezed inside

    loss = distillation_loss(student, teacher, labels, alpha=0.5, temperature=5.0)
    loss = jax.block_until_ready(loss)
    assert bool(jnp.isfinite(loss)), "loss is not finite"

    ref = _reference_loss(student, teacher, labels, 0.5, 5.0)
    assert bool(jnp.allclose(loss, ref, rtol=1e-4, atol=1e-5)), (loss, ref)

    print("KERNEL_OK")
</pallas_src>

<mosaic_0001>
module attributes {stable_mosaic.version = 11 : i64} {
  func.func @_distill_loss_kernel(%arg0: i32, %arg1: memref<8x16xf32, #tpu.memory_space<vmem>>, %arg2: memref<8x16xf32, #tpu.memory_space<vmem>>, %arg3: memref<8x1xi32, #tpu.memory_space<vmem>>, %arg4: memref<8x128xf32, #tpu.memory_space<vmem>>) attributes {dimension_semantics = [#tpu.dimension_semantics<parallel>], iteration_bounds = array<i64: 1>, scalar_prefetch = 0 : i64, scratch_operands = 0 : i64, tpu.core_type = #tpu.core_type<tc>, window_params = [{transform_indices = @transform_0, window_bounds = array<i64: 8, 16>}, {transform_indices = @transform_1, window_bounds = array<i64: 8, 16>}, {transform_indices = @transform_2, window_bounds = array<i64: 8, 1>}, {transform_indices = @transform_3, window_bounds = array<i64: 8, 128>}]} {
    %c0 = arith.constant 0 : index
    %c0_0 = arith.constant 0 : index
    %0 = vector.load %arg1[%c0, %c0_0] : memref<8x16xf32, #tpu.memory_space<vmem>>, vector<8x16xf32>
    %c0_1 = arith.constant 0 : index
    %c0_2 = arith.constant 0 : index
    %1 = vector.load %arg2[%c0_1, %c0_2] : memref<8x16xf32, #tpu.memory_space<vmem>>, vector<8x16xf32>
    %c0_3 = arith.constant 0 : index
    %c0_4 = arith.constant 0 : index
    %2 = vector.load %arg3[%c0_3, %c0_4] : memref<8x1xi32, #tpu.memory_space<vmem>>, vector<8x1xi32>
    %cst = arith.constant dense<0xFF800000> : vector<8xf32>
    %3 = vector.multi_reduction <maximumf>, %0, %cst [1] : vector<8x16xf32> to vector<8xf32>
    %4 = vector.shape_cast %3 : vector<8xf32> to vector<8x1xf32>
    %5 = vector.broadcast %4 : vector<8x1xf32> to vector<8x16xf32>
    %6 = arith.subf %0, %5 : vector<8x16xf32>
    %cst_5 = arith.constant 2.000000e-01 : f32
    %7 = vector.broadcast %cst_5 : f32 to vector<8x16xf32>
    %8 = arith.mulf %6, %7 : vector<8x16xf32>
    %9 = math.exp %8 : vector<8x16xf32>
    %cst_6 = arith.constant dense<0.000000e+00> : vector<8xf32>
    %10 = vector.multi_reduction <add>, %9, %cst_6 [1] : vector<8x16xf32> to vector<8xf32>
    %11 = vector.shape_cast %10 : vector<8xf32> to vector<8x1xf32>
    %12 = math.log %11 : vector<8x1xf32>
    %13 = arith.mulf %9, %9 : vector<8x16xf32>
    %14 = arith.mulf %13, %13 : vector<8x16xf32>
    %15 = arith.mulf %9, %14 : vector<8x16xf32>
    %cst_7 = arith.constant dense<0.000000e+00> : vector<8xf32>
    %16 = vector.multi_reduction <add>, %15, %cst_7 [1] : vector<8x16xf32> to vector<8xf32>
    %17 = vector.shape_cast %16 : vector<8xf32> to vector<8x1xf32>
    %18 = math.log %17 : vector<8x1xf32>
    %19 = arith.addf %4, %18 : vector<8x1xf32>
    %cst_8 = arith.constant dense<0xFF800000> : vector<8xf32>
    %20 = vector.multi_reduction <maximumf>, %1, %cst_8 [1] : vector<8x16xf32> to vector<8xf32>
    %21 = vector.shape_cast %20 : vector<8xf32> to vector<8x1xf32>
    %22 = vector.broadcast %21 : vector<8x1xf32> to vector<8x16xf32>
    %23 = arith.subf %1, %22 : vector<8x16xf32>
    %cst_9 = arith.constant 2.000000e-01 : f32
    %24 = vector.broadcast %cst_9 : f32 to vector<8x16xf32>
    %25 = arith.mulf %23, %24 : vector<8x16xf32>
    %26 = math.exp %25 : vector<8x16xf32>
    %cst_10 = arith.constant dense<0.000000e+00> : vector<8xf32>
    %27 = vector.multi_reduction <add>, %26, %cst_10 [1] : vector<8x16xf32> to vector<8xf32>
    %28 = vector.shape_cast %27 : vector<8xf32> to vector<8x1xf32>
    %cst_11 = arith.constant 1.000000e+00 : f32
    %29 = vector.broadcast %cst_11 : f32 to vector<8x1xf32>
    %30 = arith.divf %29, %28 : vector<8x1xf32>
    %31 = arith.mulf %26, %25 : vector<8x16xf32>
    %cst_12 = arith.constant dense<0.000000e+00> : vector<8xf32>
    %32 = vector.multi_reduction <add>, %31, %cst_12 [1] : vector<8x16xf32> to vector<8xf32>
    %33 = vector.shape_cast %32 : vector<8xf32> to vector<8x1xf32>
    %34 = arith.mulf %33, %30 : vector<8x1xf32>
    %35 = arith.mulf %26, %8 : vector<8x16xf32>
    %cst_13 = arith.constant dense<0.000000e+00> : vector<8xf32>
    %36 = vector.multi_reduction <add>, %35, %cst_13 [1] : vector<8x16xf32> to vector<8xf32>
    %37 = vector.shape_cast %36 : vector<8xf32> to vector<8x1xf32>
    %38 = arith.mulf %37, %30 : vector<8x1xf32>
    %39 = arith.subf %34, %38 : vector<8x1xf32>
    %40 = math.log %28 : vector<8x1xf32>
    %41 = arith.subf %39, %40 : vector<8x1xf32>
    %42 = arith.addf %41, %12 : vector<8x1xf32>
    %43 = tpu.iota {dimensions = array<i32: 1>} : vector<8x16xi32>
    %44 = vector.broadcast %2 : vector<8x1xi32> to vector<8x16xi32>
    %45 = arith.cmpi eq, %43, %44 : vector<8x16xi32>
    %cst_14 = arith.constant 0.000000e+00 : f32
    %46 = vector.broadcast %cst_14 : f32 to vector<8x16xf32>
    %47 = arith.select %45, %0, %46 : vector<8x16xi1>, vector<8x16xf32>
    %cst_15 = arith.constant dense<0.000000e+00> : vector<8xf32>
    %48 = vector.multi_reduction <add>, %47, %cst_15 [1] : vector<8x16xf32> to vector<8xf32>
    %49 = vector.shape_cast %48 : vector<8xf32> to vector<8x1xf32>
    %50 = arith.subf %19, %49 : vector<8x1xf32>
    %cst_16 = arith.constant 5.000000e-01 : f32
    %51 = vector.broadcast %cst_16 : f32 to vector<8x1xf32>
    %52 = arith.mulf %51, %50 : vector<8x1xf32>
    %cst_17 = arith.constant 5.000000e-01 : f32
    %cst_18 = arith.constant 2.500000e+01 : f32
    %53 = arith.mulf %cst_17, %cst_18 : f32
    %54 = vector.broadcast %53 : f32 to vector<8x1xf32>
    %55 = arith.mulf %54, %42 : vector<8x1xf32>
    %56 = arith.addf %52, %55 : vector<8x1xf32>
    %c8_i32 = arith.constant 8 : i32
    %57 = arith.muli %arg0, %c8_i32 : i32
    %58 = tpu.iota {dimensions = array<i32: 0>} : vector<8x1xi32>
    %59 = vector.broadcast %57 : i32 to vector<8x1xi32>
    %60 = arith.addi %59, %58 : vector<8x1xi32>
    %c8_i32_19 = arith.constant 8 : i32
    %61 = vector.broadcast %c8_i32_19 : i32 to vector<8x1xi32>
    %62 = arith.cmpi slt, %60, %61 : vector<8x1xi32>
    %cst_20 = arith.constant 0.000000e+00 : f32
    %63 = vector.broadcast %cst_20 : f32 to vector<8x1xf32>
    %64 = arith.select %62, %56, %63 : vector<8x1xi1>, vector<8x1xf32>
    %65 = vector.shape_cast %64 : vector<8x1xf32> to vector<1x8x1xf32>
    %cst_21 = arith.constant dense<0.000000e+00> : vector<1xf32>
    %66 = vector.multi_reduction <add>, %65, %cst_21 [1, 2] : vector<1x8x1xf32> to vector<1xf32>
    %67 = vector.shape_cast %66 : vector<1xf32> to vector<1x1x1xf32>
    %68 = vector.extract %67[0, 0, 0] : f32 from vector<1x1x1xf32>
    %69 = tpu.iota {dimensions = array<i32: 0>} : vector<8x128xi32>
    %70 = tpu.iota {dimensions = array<i32: 1>} : vector<8x128xi32>
    %c0_i32 = arith.constant 0 : i32
    %71 = vector.broadcast %c0_i32 : i32 to vector<8x128xi32>
    %72 = arith.cmpi eq, %69, %71 : vector<8x128xi32>
    %c0_i32_22 = arith.constant 0 : i32
    %73 = vector.broadcast %c0_i32_22 : i32 to vector<8x128xi32>
    %74 = arith.cmpi eq, %70, %73 : vector<8x128xi32>
    %75 = arith.andi %72, %74 : vector<8x128xi1>
    %cst_23 = arith.constant 0.000000e+00 : f32
    %76 = vector.broadcast %68 : f32 to vector<8x128xf32>
    %77 = vector.broadcast %cst_23 : f32 to vector<8x128xf32>
    %78 = arith.select %75, %76, %77 : vector<8x128xi1>, vector<8x128xf32>
    %c0_24 = arith.constant 0 : index
    %c0_25 = arith.constant 0 : index
    %79 = vector.load %arg4[%c0_24, %c0_25] : memref<8x128xf32, #tpu.memory_space<vmem>>, vector<8x128xf32>
    tpu.vector_store %arg4[%c0_24, %c0_25], %78 {strides = array<i32>} : memref<8x128xf32, #tpu.memory_space<vmem>>, vector<8x128xf32>,
    return
  }
  func.func @transform_0(%arg0: i32) -> (i32, i32) {
    %c0_i32 = arith.constant 0 : i32
    %c0_i32_0 = arith.constant 0 : i32
    return %arg0, %c0_i32 : i32, i32
  }
  func.func @transform_1(%arg0: i32) -> (i32, i32) {
    %c0_i32 = arith.constant 0 : i32
    %c0_i32_0 = arith.constant 0 : i32
    return %arg0, %c0_i32 : i32, i32
  }
  func.func @transform_2(%arg0: i32) -> (i32, i32) {
    %c0_i32 = arith.constant 0 : i32
    %c0_i32_0 = arith.constant 0 : i32
    return %arg0, %c0_i32 : i32, i32
  }
  func.func @transform_3(%arg0: i32) -> (i32, i32) {
    %c0_i32 = arith.constant 0 : i32
    %c0_i32_0 = arith.constant 0 : i32
    return %arg0, %c0_i32 : i32, i32
  }
}

</mosaic_0001>

<bundles_post_ra>
// kernel: tpu_custom_call.1
= control target key start
LH: loop header
LB: loop body
LE: loop exit
PB: predicated region body
PF: predicated region fallthrough
CT: control target
= control target key end

     0   :  { %8 = vsyncpa [#allocation3], 0  ;;  %s260_s0 = inlined_call_operand.vmem [shape: f32[8,16], index: 0, kind: input, shape index: {}]   ;;  %s261_s1 = inlined_call_operand.hbm [shape: f32[8,16], index: 1, kind: input, shape index: {}]   ;;  %s262_s2 = inlined_call_operand.vmem [shape: s32[8,1], index: 2, kind: input, shape index: {}]   ;;  %s263_s3 = inlined_call_operand.hbm [shape: f32[8,128], index: 3, kind: output, shape index: {}]  }
   0x1   :  { %9 = vsyncpa [#allocation4], 0  ;;  %s199_s12 = smov [#allocation2]   ;;  %s151_s16 = scalar_lea.hbm %s261_s1, 128 }
   0x2   :  { %s18_s13 = sshll.u32 %s199_s12, 4  ;;  %p152_p0 = scmp.ne.s32.totalorder %s261_s1, %s151_s16  ;;  %s19_s13 = int_to_ptr.vmem [resolvable:$true] %s18_s13 }
   0x3   :  { %p155_p1 = scmp.lt.u32.totalorder %s151_s16, %s261_s1 }
   0x5   :  { %p157_p2 = pnand %p155_p1, %p152_p0 }
   0x7   :  { %160 = shalt.err (!%p157_p2)
}
   0x8   :  { %s161_s21 = scalar_lea.vmem %s19_s13, 128  ;;  %p166_p4 = scmp.lt.s32.totalorder %s19_s13, %s19_s13 }
   0x9   :  { %p162_p3 = scmp.ne.s32.totalorder %s19_s13, %s161_s21  ;;  %p167_p5 = scmp.lt.s32.totalorder %s161_s21, %s161_s21 }
   0xb   :  { %p168_p6 = por %p167_p5, %p166_p4 }
   0xd   :  { %p169_p7 = pnand %p168_p6, %p162_p3 }
   0xf   :  { %172 = shalt.err (!%p169_p7)
}
  0x10   :  { %21 = dma.hbm_to_vmem [thread:$0]  %s261_s1, 128, %s19_s13, [#allocation3]  }
  0x11   :  { %195 = dma.done.wait [#allocation3], 128  }
  0x12   :  { %196 = vsyncadd [#allocation3], 4294967168  ;;  %v200_v0 = vmov 0   ;;  %vm30_vm0 = vcmask 130048   ;;  %v27_v1 = vld [vmem:[%s260_s0] sm:$0xff]  ;;  %v79_v21 = vlaneseq  ;;  %vm100_vm2 = vcmask 7168  }
  0x13   :  { %137 = vset.pattern.permute.xlu1 %v200_v0  ;;  %138 = vset.pattern.permute.xlu0 %v200_v0  ;;  %v28_v2 = vld [vmem:[#allocation2] sm:$0xff]  ;;  %v31_v4 = vsel %vm30_vm0, %v27_v1, -inf  ;;  %s201_s0 = smov [#allocation5]  }
  0x14   :  { %v29_v3 = vld [vmem:[%s262_s2] sm:$0xff]  ;;  %32 = vmax.xlane.f32.xlu0 %v31_v4  ;;  %v52_v5 = vsel %vm30_vm0, %v28_v2, -inf  ;;  %v80_v24 = vand.u32 127, %v79_v21  ;;  %v95_v62 = vshrl.u32 %v79_v21, 7  ;;  %s123_s1 = sshll.u32 %s201_s0, 4  ;;  %s124_s1 = int_to_ptr.vmem [resolvable:$true] %s123_s1 }
  0x15   :  { %82 = vperm.xlu1 %137, %v29_v3   ;;  %s173_s28 = scalar_lea.vmem %s124_s1, 128  ;;  %p178_p9 = scmp.lt.s32.totalorder %s124_s1, %s124_s1 }
  0x16   :  { %vm111_vm3 = vcmp.eq.s32.totalorder %v95_v62, 0  ;;  %vm112_vm4 = vcmp.eq.s32.totalorder %v80_v24, 0  ;;  %p174_p8 = scmp.ne.s32.totalorder %s124_s1, %s173_s28  ;;  %p179_p10 = scmp.lt.s32.totalorder %s173_s28, %s173_s28 }
  0x17   :  { %vm113_vm5 = vmand %vm111_vm3, %vm112_vm4 }
  0x18   :  { %53 = vmax.xlane.f32.xlu0 %v52_v5  ;;  %p180_p11 = por %p179_p10, %p178_p9 }
  0x1a   :  { %p181_p12 = pnand %p180_p11, %p174_p8 }
  0x94   :  { %v83_v25 = vpop.permute.xlu1 %82 }
  0x95   :  { %vm84_vm1 = vcmp.eq.s32.totalorder %v80_v24, %v83_v25 }
  0x96   :  { %v85_v28 = vsel %vm84_vm1, %v27_v1, 0.0 }
  0x97   :  { %v86_v30 = vsel %vm30_vm0, %v85_v28, 0.0 }
  0xa1   :  { %v33_v6 = vpop.xlane.xlu0 %32 }
  0xa2   :  { %v34_v7 = vsub.f32 %v27_v1, %v33_v6 }
  0xa4   :  { %v35_v8 = vmul.f32 0.2, %v34_v7 }
  0xa5   :  { %v54_v9 = vpop.xlane.xlu0 %53 }
  0xa6   :  { %v36_v10 = vmul.f32 1.442695, %v35_v8  ;;  %v55_v11 = vsub.f32 %v28_v2, %v54_v9 }
  0xa8   :  { %139 = vpow2.f32 %v36_v10  ;;  %v56_v12 = vmul.f32 0.2, %v55_v11 }
  0xaa   :  { %v57_v13 = vmul.f32 1.442695, %v56_v12 }
  0xac   :  { %141 = vpow2.f32 %v57_v13 }
  0xb2   :  { %v140_v14 = vpop.eup %139 }
  0xb3   :  { %v43_v15 = vmul.f32 %v140_v14, %v140_v14  ;;  %v38_v22 = vsel %vm30_vm0, %v140_v14, 0.0 }
  0xb5   :  { %v44_v16 = vmul.f32 %v43_v15, %v43_v15 }
  0xb6   :  { %v142_v17 = vpop.eup %141 }
  0xb7   :  { %v59_v18 = vsel %vm30_vm0, %v142_v17, 0.0  ;;  %v45_v19 = vmul.f32 %v140_v14, %v44_v16  ;;  %v64_v23 = vmul.f32 %v142_v17, %v56_v12  ;;  %v69_v27 = vmul.f32 %v142_v17, %v35_v8 }
  0xb8   :  { %60 = vadd.xlane.f32.xlu1 %v59_v18 }
  0xb9   :  { %v46_v20 = vsel %vm30_vm0, %v45_v19, 0.0  ;;  %v65_v26 = vsel %vm30_vm0, %v64_v23, 0.0  ;;  %v70_v29 = vsel %vm30_vm0, %v69_v27, 0.0 }
  0xba   :  { %47 = vadd.xlane.f32.xlu0 %v46_v20 }
  0xbe   :  { %39 = vadd.xlane.f32.xlu0 %v38_v22 }
  0xc2   :  { %66 = vadd.xlane.f32.xlu0 %v65_v26 }
  0xc6   :  { %71 = vadd.xlane.f32.xlu0 %v70_v29 }
  0xca   :  { %87 = vadd.xlane.f32.xlu0 %v86_v30 }
 0x145   :  { %v61_v31 = vpop.xlane.xlu1 %60 }
 0x146   :  { %143 = vrcp.f32 %v61_v31 }
 0x147   :  { %v48_v32 = vpop.xlane.xlu0 %47 }
 0x148   :  { %145 = vlog2.f32 %v48_v32 }
 0x149   :  { %147 = vlog2.f32 %v61_v31 }
 0x14b   :  { %v40_v33 = vpop.xlane.xlu0 %39 }
 0x14c   :  { %149 = vlog2.f32 %v40_v33 }
 0x14f   :  { %v67_v34 = vpop.xlane.xlu0 %66 }
 0x150   :  { %v144_v35 = vpop.eup %143 }
 0x151   :  { %v68_v40 = vmul.f32 %v144_v35, %v67_v34 }
 0x152   :  { %v146_v36 = vpop.eup %145 }
 0x153   :  { %v148_v37 = vpop.eup %147  ;;  %v50_v38 = vmul.f32 0.6931472, %v146_v36  ;;  %v72_v39 = vpop.xlane.xlu0 %71 }
 0x154   :  { %v73_v41 = vmul.f32 %v144_v35, %v72_v39  ;;  %v76_v44 = vmul.f32 0.6931472, %v148_v37 }
 0x155   :  { %v51_v42 = vadd.f32 %v50_v38, %v33_v6 }
 0x156   :  { %v150_v43 = vpop.eup %149  ;;  %v74_v45 = vsub.f32 %v68_v40, %v73_v41 }
 0x157   :  { %v42_v46 = vmul.f32 0.6931472, %v150_v43  ;;  %v88_v47 = vpop.xlane.xlu0 %87 }
 0x158   :  { %v77_v48 = vsub.f32 %v74_v45, %v76_v44  ;;  %v89_v49 = vsub.f32 %v51_v42, %v88_v47 }
 0x15a   :  { %v78_v50 = vadd.f32 %v77_v48, %v42_v46  ;;  %v90_v51 = vmul.f32 0.5, %v89_v49 }
 0x15c   :  { %v91_v52 = vmul.f32 12.5, %v78_v50 }
 0x15e   :  { %v92_v53 = vadd.f32 %v91_v52, %v90_v51 }
 0x160   :  { %v101_v54 = vsel %vm100_vm2, %v92_v53, 0.0 }
 0x161   :  { %102 = vadd.xlane.f32.xlu0 %v101_v54 }
 0x1ee   :  { %v103_v55 = vpop.xlane.xlu0 %102 }
 0x1ef   :  { %v104_v56 = vrot.slane %v103_v55, 4 }
 0x1f1   :  { %v105_v57 = vadd.f32 %v104_v56, %v103_v55 }
 0x1f3   :  { %v106_v58 = vrot.slane %v105_v57, 2 }
 0x1f5   :  { %v107_v59 = vadd.f32 %v106_v58, %v105_v57 }
 0x1f7   :  { %v108_v60 = vrot.slane %v107_v59, 1 }
 0x1f9   :  { %v109_v61 = vadd.f32 %v108_v60, %v107_v59 }
 0x1fb   :  { %132 = vpush %v109_v61 }
 0x22c   :  { %s133_s2 = spop %132 }
 0x22d   :  { %v114_v63 = vstv %s133_s2 }
 0x22e   :  { %v115_v0 = vsel %vm113_vm5, %v114_v63, 0.0 }
 0x22f   :  { %116 = vst [vmem:[#allocation5] sm:$0xff] %v115_v0 }
 0x230   :  { %184 = shalt.err (!%p181_p12)
}
 0x231   :  { %s185_s4 = scalar_lea.hbm %s263_s3, 128 }
 0x232   :  { %p186_p13 = scmp.ne.s32.totalorder %s263_s3, %s185_s4  ;;  %p189_p0 = scmp.lt.u32.totalorder %s185_s4, %s263_s3 }
 0x234   :  { %p191_p1 = pnand %p189_p0, %p186_p13 }
 0x236   :  { %194 = shalt.err (!%p191_p1)
}
 0x237   :  { %126 = dma.vmem_to_hbm [thread:$0]  %s124_s1, 128, %s263_s3, [#allocation4]  }
 0x238   :  { %197 = dma.done.wait [#allocation4], 128  }
 0x239   :  { %198 = vsyncadd [#allocation4], 4294967168 }
 0x23a   :  { %130 = vsyncpa [#allocation3], 1 }
 0x23b   :  { %131 = vsyncpa [#allocation4], 1 }

</bundles_post_ra>
